<compile_context>
chip_gen: v7x
topology: tpu7x:2x2x1
jax: 0.10.0
libtpu: 0.0.40
codegen_flags: <defaults>
</compile_context>

<pallas_src>
import functools

import jax
import jax.numpy as jnp
from jax import lax
from jax.experimental import pallas as pl
from jax.experimental.pallas import tpu as pltpu


_VMEM_LIMIT = 32 * 1024 * 1024
# Contract the LAST axis of both operands: x (M,K) . w (N,K) -> (M,N), no w.T.
_DOT_DIMS = (((1,), (1,)), ((), ()))
# Ordinary (M,Kc) @ (Kc,N) for the in-kernel one-hot scale expansion.
_EXPAND_DIMS = (((1,), (0,)), ((), ()))


# ----------------------------------------------------------------------------
# Small helpers
# ----------------------------------------------------------------------------
def _round_up(v, m):
    return -(-v // m) * m


def _pad2d(a, rows, cols, value=0.0):
    r, c = a.shape
    return jnp.pad(a, ((0, rows - r), (0, cols - c)), constant_values=value)


def _bf16_round(a):
    """Round to bf16-representable f32 (makes in-kernel one-hot expansion exact)."""
    return a.astype(jnp.bfloat16).astype(jnp.float32)


def _pick_tile(dim, align, max_tile):
    """Largest tile (multiple of `align`, <= max_tile) that minimises padding."""
    best, best_pad = align, _round_up(dim, align)
    c = 2 * align
    while c <= max_tile:
        p = _round_up(dim, c)
        if p <= best_pad:
            best, best_pad = c, p
        c += align
    return best


# ----------------------------------------------------------------------------
# Prologue kernels (run once per call, NOT once per batch/N tile)
# ----------------------------------------------------------------------------
def _fq_dq_kernel(v_ref, s_ref, z_ref, inv_ref, o_ref, *, qmax):
    """Elementwise fake-quant/dequant: ((clip(round(v*inv + z), 0, qmax) - z) * s)."""
    v = v_ref[...].astype(jnp.float32)
    s, z, inv = s_ref[...], z_ref[...], inv_ref[...]
    q = jnp.clip(jnp.round(v * inv + z), 0.0, qmax)
    o_ref[...] = ((q - z) * s).astype(o_ref.dtype)


def _w_fq_compact_kernel(w_ref, s_ref, z_ref, inv_ref, e_ref, o_ref, *,
                         qmax, tk, k_valid, mask_ragged):
    """Weight fake-quant with compact per-block scales.

    Per-block -> per-feature expansion is done in-kernel by multiplying the
    compact (tn, tk/ibs) scales with a one-hot (tk/ibs, tk) matrix on the MXU.
    All scale values are bf16-representable, so the expansion is exact.
    """
    e = e_ref[...]
    s = lax.dot_general(s_ref[...], e, _EXPAND_DIMS, preferred_element_type=jnp.float32)
    z = lax.dot_general(z_ref[...], e, _EXPAND_DIMS, preferred_element_type=jnp.float32)
    inv = lax.dot_general(inv_ref[...], e, _EXPAND_DIMS, preferred_element_type=jnp.float32)
    w = w_ref[...].astype(jnp.float32)
    q = jnp.clip(jnp.round(w * inv + z), 0.0, qmax)
    dq = (q - z) * s
    if mask_ragged:
        # Ragged final block: zero the dequantized padding columns (>= K).
        col = lax.broadcasted_iota(jnp.int32, dq.shape, 1) + pl.program_id(1) * tk
        dq = jnp.where(col < k_valid, dq, 0.0)
    o_ref[...] = dq.astype(o_ref.dtype)


# ----------------------------------------------------------------------------
# Main kernel: tiled matmul + bias (operands already effective / quantized)
# ----------------------------------------------------------------------------
def _matmul_bias_kernel(x_ref, w_ref, b_ref, o_ref, acc_ref):
    k = pl.program_id(2)

    @pl.when(k == 0)
    def _():
        acc_ref[...] = jnp.zeros_like(acc_ref)

    acc_ref[...] += lax.dot_general(
        x_ref[...], w_ref[...],
        dimension_numbers=_DOT_DIMS,
        preferred_element_type=jnp.float32,
    )

    @pl.when(k == pl.num_programs(2) - 1)
    def _():
        o_ref[...] = (acc_ref[...] + b_ref[...]).astype(o_ref.dtype)


# ----------------------------------------------------------------------------
# Pallas launchers
# ----------------------------------------------------------------------------
def _fake_quant_dequant(vals, s, z, inv, *, qmax, bm, bk, out_dtype):
    """One-shot elementwise fake-quant/dequant over a padded 2-D array."""
    Mp, Kp = vals.shape
    grid = (Mp // bm, Kp // bk)
    v_spec = pl.BlockSpec((bm, bk), lambda i, j: (i, j))
    if s.shape[0] == 1:  # per-feature scales shared across rows (activations)
        sc_spec = pl.BlockSpec((1, bk), lambda i, j: (0, j))
    else:                # full per-element scales (fallback weight path)
        sc_spec = v_spec
    return pl.pallas_call(
        functools.partial(_fq_dq_kernel, qmax=qmax),
        out_shape=jax.ShapeDtypeStruct((Mp, Kp), out_dtype),
        grid_spec=pl.GridSpec(grid=grid,
                              in_specs=[v_spec, sc_spec, sc_spec, sc_spec],
                              out_specs=v_spec),
        compiler_params=pltpu.CompilerParams(
            dimension_semantics=("parallel", "parallel"),
            vmem_limit_bytes=_VMEM_LIMIT),
    )(vals, s, z, inv)


def _dequant_weight_compact(w_p, s_c, z_c, inv_c, expand, *, qmax, tn, tk,
                            k_valid, mask_ragged, out_dtype):
    Np, Kp = w_p.shape
    nbk = expand.shape[0]
    grid = (Np // tn, Kp // tk)
    w_spec = pl.BlockSpec((tn, tk), lambda i, j: (i, j))
    c_spec = pl.BlockSpec((tn, nbk), lambda i, j: (i, j))
    e_spec = pl.BlockSpec((nbk, tk), lambda i, j: (0, 0))
    kern = functools.partial(_w_fq_compact_kernel, qmax=qmax, tk=tk,
                             k_valid=k_valid, mask_ragged=mask_ragged)
    return pl.pallas_call(
        kern,
        out_shape=jax.ShapeDtypeStruct((Np, Kp), out_dtype),
        grid_spec=pl.GridSpec(grid=grid,
                              in_specs=[w_spec, c_spec, c_spec, c_spec, e_spec],
                              out_specs=w_spec),
        compiler_params=pltpu.CompilerParams(
            dimension_semantics=("parallel", "parallel"),
            vmem_limit_bytes=_VMEM_LIMIT),
    )(w_p, s_c, z_c, inv_c, expand)


# ----------------------------------------------------------------------------
# Forward wrapper (mirrors LinearPerBlockQuant.forward for the three modes)
# ----------------------------------------------------------------------------
def linear_per_block_quant_forward(
    x, weight, bias, w_scales, w_zeros, a_scales, a_zeros, *,
    in_block_size, w_bits=8, a_bits=8, mode="float", use_bf16_mxu=True,
    tm_max=256, tn_max=512, tk_max=1024,
):
    assert mode in ("float", "fake_quant", "calibration")
    B, K = x.shape
    N, K2 = weight.shape
    assert K == K2
    ibs = in_block_size

    w_qmax = float(2 ** w_bits - 1)
    a_qmax = float(2 ** a_bits - 1)
    # Per the PyTorch forward():
    #   float       -> no quant at all
    #   calibration -> weights quantized, activations passed through
    #   fake_quant  -> both quantized (activations only if a_bits < 16)
    quant_w = mode != "float"
    quant_a = (mode == "fake_quant") and (a_bits < 16)
    out_dtype = x.dtype
    w_mxu_dtype = jnp.bfloat16 if use_bf16_mxu else weight.dtype
    x_mxu_dtype = jnp.bfloat16 if use_bf16_mxu else x.dtype

    # --- Tile selection: lane-dense (multiples of 128) on N/K, 16-row aligned
    #     M for packed bf16 sublanes; prefer tiles that minimise padding.
    row_align = 16 if use_bf16_mxu else 8
    tm = _pick_tile(B, row_align, tm_max)
    tn = _pick_tile(N, 128, tn_max)
    tk = _pick_tile(K, 128, tk_max)
    Bp, Np, Kp = _round_up(B, tm), _round_up(N, tn), _round_up(K, tk)

    bias_vec = bias if bias is not None else jnp.zeros((N,), jnp.float32)
    bias_p = jnp.pad(bias_vec.astype(jnp.float32), (0, Np - N)).reshape(1, Np)

    # ---------------- one-time weight fake-quant/dequant prologue -----------
    w_p = _pad2d(weight, Np, Kp)
    if quant_w:
        compact_ok = (use_bf16_mxu and tk % ibs == 0
                      and ((tk // ibs) % 128 == 0 or Kp == tk))
        if compact_ok:
            # Stream only compact per-block tensors; expand in-kernel (exact).
            nbk = tk // ibs
            NBp = Kp // ibs
            ws_c = _bf16_round(_pad2d(w_scales.astype(jnp.float32), Np, NBp, 1.0))
            wz_c = _bf16_round(_pad2d(w_zeros.astype(jnp.float32), Np, NBp, 0.0))
            wi_c = _bf16_round(1.0 / ws_c)
            expand = (jnp.arange(tk)[None, :] // ibs
                      == jnp.arange(nbk)[:, None]).astype(jnp.float32)
            w_eff = _dequant_weight_compact(
                w_p, ws_c, wz_c, wi_c, expand, qmax=w_qmax, tn=tn, tk=tk,
                k_valid=K, mask_ragged=(K % ibs != 0), out_dtype=w_mxu_dtype)
        else:
            # Fallback (odd block sizes / exact-f32 mode): expand once in XLA.
            ws = jnp.repeat(w_scales.astype(jnp.float32), ibs, axis=1)[:, :K]
            wz = jnp.repeat(w_zeros.astype(jnp.float32), ibs, axis=1)[:, :K]
            if use_bf16_mxu:
                ws, wz = _bf16_round(ws), _bf16_round(wz)
            wi = 1.0 / ws
            if use_bf16_mxu:
                wi = _bf16_round(wi)
            ws_p = _pad2d(ws, Np, Kp, 1.0)
            wz_p = _pad2d(wz, Np, Kp, 0.0)
            wi_p = _pad2d(wi, Np, Kp, 1.0)
            w_eff = _fake_quant_dequant(w_p, ws_p, wz_p, wi_p, qmax=w_qmax,
                                        bm=tn, bk=tk, out_dtype=w_mxu_dtype)
    else:
        w_eff = w_p.astype(w_mxu_dtype)

    # ---------------- one-time activation fake-quant prologue ---------------
    x_p = _pad2d(x, Bp, Kp)
    if quant_a:
        a_s = jnp.repeat(a_scales.astype(jnp.float32), ibs)[:K]
        a_z = jnp.repeat(a_zeros.astype(jnp.float32), ibs)[:K]
        if use_bf16_mxu:
            a_s, a_z = _bf16_round(a_s), _bf16_round(a_z)
        a_i = 1.0 / a_s
        if use_bf16_mxu:
            a_i = _bf16_round(a_i)
        a_s_p = jnp.pad(a_s, (0, Kp - K), constant_values=1.0).reshape(1, Kp)
        a_z_p = jnp.pad(a_z, (0, Kp - K), constant_values=0.0).reshape(1, Kp)
        a_i_p = jnp.pad(a_i, (0, Kp - K), constant_values=1.0).reshape(1, Kp)
        x_main = _fake_quant_dequant(x_p, a_s_p, a_z_p, a_i_p, qmax=a_qmax,
                                     bm=tm, bk=tk, out_dtype=x_mxu_dtype)
    else:
        x_main = x_p.astype(x_mxu_dtype)

    # ---------------- steady-state tiled matmul + bias ----------------------
    grid = (Bp // tm, Np // tn, Kp // tk)
    x_spec = pl.BlockSpec((tm, tk), lambda i, j, k: (i, k))
    b_spec = pl.BlockSpec((1, tn), lambda i, j, k: (0, j))
    o_spec = pl.BlockSpec((tm, tn), lambda i, j, k: (i, j))
    n_w_tiles = (Np // tn) * (Kp // tk)
    if Bp // tm == 1 and n_w_tiles >= 3:
        # Small-batch regime is weight-DMA-bound: prefetch the weight deeper.
        w_spec = pl.BlockSpec((tn, tk), lambda i, j, k: (j, k),
                              pipeline_mode=pl.Buffered(3))
    else:
        w_spec = pl.BlockSpec((tn, tk), lambda i, j, k: (j, k))

    out_p = pl.pallas_call(
        _matmul_bias_kernel,
        out_shape=jax.ShapeDtypeStruct((Bp, Np), out_dtype),
        grid_spec=pltpu.PrefetchScalarGridSpec(
            num_scalar_prefetch=0,
            grid=grid,
            in_specs=[x_spec, w_spec, b_spec],
            out_specs=o_spec,
            scratch_shapes=[pltpu.VMEM((tm, tn), jnp.float32)],
        ),
        compiler_params=pltpu.CompilerParams(
            dimension_semantics=("parallel", "parallel", "arbitrary"),
            vmem_limit_bytes=_VMEM_LIMIT),
    )(x_main, w_eff, bias_p)

    return out_p[:B, :N]


# ----------------------------------------------------------------------------
# Calibration helpers (pure-JAX glue, mirrors calibrate_weight/_activation;
# ragged final block handled via +/-inf padding).
# ----------------------------------------------------------------------------
def calibrate_weight(weight, in_block_size, w_bits=8):
    N, K = weight.shape
    nb = -(-K // in_block_size)
    pad = nb * in_block_size - K
    qmin, qmax = 0.0, float(2 ** w_bits - 1)
    w_min = jnp.pad(weight, ((0, 0), (0, pad)), constant_values=jnp.inf
                    ).reshape(N, nb, in_block_size).min(-1)
    w_max = jnp.pad(weight, ((0, 0), (0, pad)), constant_values=-jnp.inf
                    ).reshape(N, nb, in_block_size).max(-1)
    scale = jnp.where(w_max > w_min, (w_max - w_min) / (qmax - qmin), 1.0)
    zero = jnp.where(w_max > w_min, qmin - w_min / scale, 0.0)
    return scale, zero


def calibrate_activation(x, in_block_size, a_bits=8):
    B, K = x.shape
    nb = -(-K // in_block_size)
    pad = nb * in_block_size - K
    qmin, qmax = 0.0, float(2 ** a_bits - 1)
    a_min = jnp.pad(x, ((0, 0), (0, pad)), constant_values=jnp.inf
                    ).reshape(B, nb, in_block_size).min(axis=(0, 2))
    a_max = jnp.pad(x, ((0, 0), (0, pad)), constant_values=-jnp.inf
                    ).reshape(B, nb, in_block_size).max(axis=(0, 2))
    scale = jnp.where(a_max > a_min, (a_max - a_min) / (qmax - qmin), 1.0)
    zero = jnp.where(a_max > a_min, qmin - a_min / scale, 0.0)
    return scale, zero


# ----------------------------------------------------------------------------
# Pure-JAX reference (same math as the kernels: bf16-rounded scales + bf16 MXU
# operands when use_bf16_mxu, exact f32 otherwise).
# ----------------------------------------------------------------------------
def ref_forward(x, weight, bias, w_scales, w_zeros, a_scales, a_zeros, *,
                in_block_size, w_bits, a_bits, mode, use_bf16_mxu=True):
    N, K = weight.shape
    ibs = in_block_size
    out_dtype = x.dtype
    bias_f = (bias if bias is not None else jnp.zeros((N,), jnp.float32)
              ).astype(jnp.float32)
    w_qmax = float(2 ** w_bits - 1)
    a_qmax = float(2 ** a_bits - 1)
    quant_w = mode != "float"
    quant_a = (mode == "fake_quant") and (a_bits < 16)
    w_dt = jnp.bfloat16 if use_bf16_mxu else weight.dtype
    x_dt = jnp.bfloat16 if use_bf16_mxu else x.dtype

    if quant_w:
        s = jnp.repeat(w_scales.astype(jnp.float32), ibs, axis=1)[:, :K]
        z = jnp.repeat(w_zeros.astype(jnp.float32), ibs, axis=1)[:, :K]
        if use_bf16_mxu:
            s, z = _bf16_round(s), _bf16_round(z)
            inv = _bf16_round(1.0 / s)
        else:
            inv = 1.0 / s
        q = jnp.clip(jnp.round(weight.astype(jnp.float32) * inv + z), 0.0, w_qmax)
        w_eff = ((q - z) * s).astype(w_dt)
    else:
        w_eff = weight.astype(w_dt)

    if quant_a:
        s = jnp.repeat(a_scales.astype(jnp.float32), ibs)[:K][None, :]
        z = jnp.repeat(a_zeros.astype(jnp.float32), ibs)[:K][None, :]
        if use_bf16_mxu:
            s, z = _bf16_round(s), _bf16_round(z)
            inv = _bf16_round(1.0 / s)
        else:
            inv = 1.0 / s
        q = jnp.clip(jnp.round(x.astype(jnp.float32) * inv + z), 0.0, a_qmax)
        x_eff = ((q - z) * s).astype(x_dt)
    else:
        x_eff = x.astype(x_dt)

    acc = lax.dot_general(x_eff, w_eff, dimension_numbers=_DOT_DIMS,
                          preferred_element_type=jnp.float32)
    return (acc + bias_f[None, :]).astype(out_dtype)


# ----------------------------------------------------------------------------
if __name__ == "__main__":
    key = jax.random.PRNGKey(0)

    def make_inputs(k, B, IN, OUT):
        kx, kw, kb = jax.random.split(k, 3)
        x = jax.random.normal(kx, (B, IN), dtype=jnp.float32)
        w = jax.random.normal(kw, (OUT, IN), dtype=jnp.float32) * 0.1
        b = jax.random.normal(kb, (OUT,), dtype=jnp.float32) * 0.01
        return x, w, b

    # (B, IN, OUT, BLOCK, modes, use_bf16_mxu settings)
    cases = [
        (16, 32, 16, 4, ("float", "calibration", "fake_quant"), (True,)),   # tiny, all modes
        (16, 32, 16, 4, ("fake_quant",), (False,)),                         # exact-f32 path
        (8, 2048, 600, 4, ("fake_quant",), (True,)),                        # multi-tile grid
        (4, 30, 20, 4, ("fake_quant",), (True,)),                           # ragged final block
    ]

    failures = []
    kcase = key
    for (B, IN, OUT, BLOCK, modes, mxu_list) in cases:
        kcase, sub = jax.random.split(kcase)
        x, weight, bias = make_inputs(sub, B, IN, OUT)
        w_scales, w_zeros = calibrate_weight(weight, BLOCK, 8)
        a_scales, a_zeros = calibrate_activation(x, BLOCK, 8)
        for use_bf16 in mxu_list:
            for mode in modes:
                out = linear_per_block_quant_forward(
                    x, weight, bias, w_scales, w_zeros, a_scales, a_zeros,
                    in_block_size=BLOCK, w_bits=8, a_bits=8, mode=mode,
                    use_bf16_mxu=use_bf16)
                out = jax.block_until_ready(out)
                ref = ref_forward(
                    x, weight, bias, w_scales, w_zeros, a_scales, a_zeros,
                    in_block_size=BLOCK, w_bits=8, a_bits=8, mode=mode,
                    use_bf16_mxu=use_bf16)
                tol = 1e-3 if use_bf16 else 1e-4
                good = (out.shape == ref.shape
                        and bool(jnp.allclose(out, ref, rtol=tol, atol=tol)))
                if not good:
                    err = (float(jnp.max(jnp.abs(out - ref)))
                           if out.shape == ref.shape else float("nan"))
                    failures.append(
                        f"B={B} IN={IN} OUT={OUT} mode={mode} bf16={use_bf16} "
                        f"max_abs_err={err}")

    if failures:
        for f in failures:
            print("FAIL:", f)
    else:
        print("KERNEL_OK")
</pallas_src>

<mosaic_0001>
module attributes {stable_mosaic.version = 11 : i64} {
  func.func @_matmul_bias_kernel(%arg0: i32, %arg1: i32, %arg2: i32, %arg3: memref<16x128xbf16, #tpu.memory_space<vmem>>, %arg4: memref<128x128xbf16, #tpu.memory_space<vmem>>, %arg5: memref<1x128xf32, #tpu.memory_space<vmem>>, %arg6: memref<16x128xf32, #tpu.memory_space<vmem>>, %arg7: memref<16x128xf32, #tpu.memory_space<vmem>>) attributes {dimension_semantics = [#tpu.dimension_semantics<parallel>, #tpu.dimension_semantics<parallel>, #tpu.dimension_semantics<arbitrary>], iteration_bounds = array<i64: 1, 1, 1>, scalar_prefetch = 0 : i64, scratch_operands = 1 : i64, tpu.core_type = #tpu.core_type<tc>, window_params = [{transform_indices = @transform_0, window_bounds = array<i64: 16, 128>}, {transform_indices = @transform_1, window_bounds = array<i64: 128, 128>}, {transform_indices = @transform_2, window_bounds = array<i64: 1, 128>}, {transform_indices = @transform_3, window_bounds = array<i64: 16, 128>}]} {
    %c0_i32 = arith.constant 0 : i32
    %0 = arith.cmpi eq, %arg2, %c0_i32 : i32
    %1 = arith.extui %0 : i1 to i32
    %c0_i32_0 = arith.constant 0 : i32
    %2 = arith.cmpi ne, %1, %c0_i32_0 : i32
    scf.if %2 {
      %cst_10 = arith.constant 0.000000e+00 : f32
      %12 = vector.broadcast %cst_10 : f32 to vector<16x128xf32>
      %c0_11 = arith.constant 0 : index
      %c0_12 = arith.constant 0 : index
      %13 = vector.load %arg7[%c0_11, %c0_12] : memref<16x128xf32, #tpu.memory_space<vmem>>, vector<16x128xf32>
      tpu.vector_store %arg7[%c0_11, %c0_12], %12 {strides = array<i32>} : memref<16x128xf32, #tpu.memory_space<vmem>>, vector<16x128xf32>,
    } else {
    }
    %c0 = arith.constant 0 : index
    %c0_1 = arith.constant 0 : index
    %3 = vector.load %arg7[%c0, %c0_1] : memref<16x128xf32, #tpu.memory_space<vmem>>, vector<16x128xf32>
    %c0_2 = arith.constant 0 : index
    %c0_3 = arith.constant 0 : index
    %4 = vector.load %arg3[%c0_2, %c0_3] : memref<16x128xbf16, #tpu.memory_space<vmem>>, vector<16x128xbf16>
    %c0_4 = arith.constant 0 : index
    %c0_5 = arith.constant 0 : index
    %5 = vector.load %arg4[%c0_4, %c0_5] : memref<128x128xbf16, #tpu.memory_space<vmem>>, vector<128x128xbf16>
    %cst = arith.constant dense<0.000000e+00> : vector<16x128xf32>
    %6 = tpu.matmul %4, %5, %cst {dimension_numbers = #tpu.dot_dimension_numbers<[1], [1], [0], [0], [0, 0, 1, 0], [], []>} : vector<16x128xbf16>, vector<128x128xbf16>, vector<16x128xf32> -> vector<16x128xf32>
    %7 = arith.addf %3, %6 : vector<16x128xf32>
    %c0_6 = arith.constant 0 : index
    %c0_7 = arith.constant 0 : index
    %8 = vector.load %arg7[%c0_6, %c0_7] : memref<16x128xf32, #tpu.memory_space<vmem>>, vector<16x128xf32>
    tpu.vector_store %arg7[%c0_6, %c0_7], %7 {strides = array<i32>} : memref<16x128xf32, #tpu.memory_space<vmem>>, vector<16x128xf32>,
    %c0_i32_8 = arith.constant 0 : i32
    %9 = arith.cmpi eq, %arg2, %c0_i32_8 : i32
    %10 = arith.extui %9 : i1 to i32
    %c0_i32_9 = arith.constant 0 : i32
    %11 = arith.cmpi ne, %10, %c0_i32_9 : i32
    scf.if %11 {
      %c0_10 = arith.constant 0 : index
      %c0_11 = arith.constant 0 : index
      %12 = vector.load %arg7[%c0_10, %c0_11] : memref<16x128xf32, #tpu.memory_space<vmem>>, vector<16x128xf32>
      %c0_12 = arith.constant 0 : index
      %c0_13 = arith.constant 0 : index
      %13 = vector.load %arg5[%c0_12, %c0_13] : memref<1x128xf32, #tpu.memory_space<vmem>>, vector<1x128xf32>
      %14 = vector.broadcast %13 : vector<1x128xf32> to vector<16x128xf32>
      %15 = arith.addf %12, %14 : vector<16x128xf32>
      %c0_14 = arith.constant 0 : index
      %c0_15 = arith.constant 0 : index
      %16 = vector.load %arg6[%c0_14, %c0_15] : memref<16x128xf32, #tpu.memory_space<vmem>>, vector<16x128xf32>
      tpu.vector_store %arg6[%c0_14, %c0_15], %15 {strides = array<i32>} : memref<16x128xf32, #tpu.memory_space<vmem>>, vector<16x128xf32>,
    } else {
    }
    return
  }
  func.func @transform_0(%arg0: i32, %arg1: i32, %arg2: i32) -> (i32, i32) {
    %c0_i32 = arith.constant 0 : i32
    return %arg0, %arg2 : i32, i32
  }
  func.func @transform_1(%arg0: i32, %arg1: i32, %arg2: i32) -> (i32, i32) {
    %c0_i32 = arith.constant 0 : i32
    return %arg1, %arg2 : i32, i32
  }
  func.func @transform_2(%arg0: i32, %arg1: i32, %arg2: i32) -> (i32, i32) {
    %c0_i32 = arith.constant 0 : i32
    %c0_i32_0 = arith.constant 0 : i32
    return %c0_i32, %arg1 : i32, i32
  }
  func.func @transform_3(%arg0: i32, %arg1: i32, %arg2: i32) -> (i32, i32) {
    %c0_i32 = arith.constant 0 : i32
    return %arg0, %arg1 : i32, i32
  }
}

</mosaic_0001>

<bundles_post_ra>
// kernel: tpu_custom_call.1
= control target key start
LH: loop header
LB: loop body
LE: loop exit
PB: predicated region body
PF: predicated region fallthrough
CT: control target
= control target key end

     0   :  { %8 = vsyncpa [#allocation4], 0  ;;  %s400_s0 = inlined_call_operand.hbm [shape: bf16[16,128], index: 0, kind: input, shape index: {}]   ;;  %s401_s1 = inlined_call_operand.hbm [shape: bf16[128,128], index: 1, kind: input, shape index: {}]   ;;  %s402_s2 = inlined_call_operand.vmem [shape: f32[1,128], index: 2, kind: input, shape index: {}]   ;;  %s403_s3 = inlined_call_operand.hbm [shape: f32[16,128], index: 3, kind: output, shape index: {}]  }
   0x1   :  { %9 = vsyncpa [#allocation7], 0 }
   0x2   :  { %10 = vsyncpa [#allocation5], 0  ;;  %s332_s12 = smov [#allocation3]   ;;  %s260_s16 = scalar_lea.hbm %s400_s0, 128 }
   0x3   :  { %s16_s13 = sshll.u32 %s332_s12, 4  ;;  %p261_p0 = scmp.ne.s32.totalorder %s400_s0, %s260_s16  ;;  %s17_s13 = int_to_ptr.vmem [resolvable:$true] %s16_s13 }
   0x4   :  { %p264_p1 = scmp.lt.u32.totalorder %s260_s16, %s400_s0 }
   0x6   :  { %p266_p2 = pnand %p264_p1, %p261_p0 }
   0x8   :  { %269 = shalt.err (!%p266_p2)
}
   0x9   :  { %s270_s21 = scalar_lea.vmem %s17_s13, 128  ;;  %p275_p4 = scmp.lt.s32.totalorder %s17_s13, %s17_s13 }
   0xa   :  { %p271_p3 = scmp.ne.s32.totalorder %s17_s13, %s270_s21  ;;  %p276_p5 = scmp.lt.s32.totalorder %s270_s21, %s270_s21 }
   0xc   :  { %p277_p6 = por %p276_p5, %p275_p4 }
   0xe   :  { %p278_p7 = pnand %p277_p6, %p271_p3 }
  0x10   :  { %281 = shalt.err (!%p278_p7)
}
  0x11   :  { %s333_s22 = smov 64   ;;  %s334_s23 = smov 4  }
  0x12   :  { %22 = dma.hbm_to_vmem [thread:$0]  %s400_s0, 128, %s17_s13, [#allocation4], %s333_s22, %s333_s22, %s334_s23  }
  0x13   :  { %s335_s26 = smov [#allocation6]   ;;  %s282_s30 = scalar_lea.hbm %s401_s1, 1024 }
  0x14   :  { %s28_s27 = sshll.u32 %s335_s26, 4  ;;  %p283_p8 = scmp.ne.s32.totalorder %s401_s1, %s282_s30  ;;  %s29_s27 = int_to_ptr.vmem [resolvable:$true] %s28_s27 }
  0x15   :  { %p286_p9 = scmp.lt.u32.totalorder %s282_s30, %s401_s1 }
  0x17   :  { %p288_p10 = pnand %p286_p9, %p283_p8 }
  0x19   :  { %291 = shalt.err (!%p288_p10)
}
  0x1a   :  { %s292_s8 = scalar_lea.vmem %s29_s27, 1024  ;;  %p297_p12 = scmp.lt.s32.totalorder %s29_s27, %s29_s27 }
  0x1b   :  { %p293_p11 = scmp.ne.s32.totalorder %s29_s27, %s292_s8  ;;  %p298_p13 = scmp.lt.s32.totalorder %s292_s8, %s292_s8 }
  0x1d   :  { %p299_p0 = por %p298_p13, %p297_p12 }
  0x1f   :  { %p300_p1 = pnand %p299_p0, %p293_p11 }
  0x21   :  { %303 = shalt.err (!%p300_p1)
}
  0x22   :  { %34 = dma.hbm_to_vmem [thread:$0]  %s401_s1, 1024, %s29_s27, [#allocation7], %s333_s22, %s333_s22, %s334_s23  }
  0x23   :  { %326 = dma.done.wait [#allocation4], 128  }
  0x24   :  { %327 = vsyncadd [#allocation4], 4294967168 }
  0x25   :  { %328 = dma.done.wait [#allocation7], 1024  }
  0x26   :  { %329 = vsyncadd [#allocation7], 4294966272  ;;  %v336_v0 = vmov 0.0   ;;  %vm337_vm0 = vmmov 0   ;;  %v251_v1 = vld [vmem:[#allocation6] sm:$0xff]   ;;  %v252_v2 = vld [vmem:[#allocation6 + $0x8] sm:$0xff]  }
  0x27   :  { %222 = vmatprep.subr.bf16.mxu0 %v336_v0  ;;  %238 = vmatprep.mubr.msk.bf16.mxu0 %vm337_vm0, %v336_v0  ;;  %v253_v3 = vld [vmem:[#allocation6 + $0x10] sm:$0xff]   ;;  %v254_v4 = vld [vmem:[#allocation6 + $0x18] sm:$0xff]   ;;  %v255_v5 = vld [vmem:[#allocation6 + $0x20] sm:$0xff]   ;;  %s338_s11 = smov [#allocation8]  }
  0x28   :  { %223 = vmatpush3.bf16.xpose.msra.mxu0 %v251_v1  ;;  %v256_v6 = vld [vmem:[#allocation6 + $0x28] sm:$0xff]   ;;  %v257_v7 = vld [vmem:[#allocation6 + $0x30] sm:$0xff]   ;;  %v258_v8 = vld [vmem:[#allocation6 + $0x38] sm:$0xff]   ;;  %s190_s12 = sshll.u32 %s338_s11, 4  ;;  %s191_s12 = int_to_ptr.vmem [resolvable:$true] %s190_s12 }
  0x29   :  { %224 = vmatprep.subr.bf16.mxu0 %v336_v0  ;;  %v259_v9 = vld [vmem:[#allocation3] sm:$0xff]   ;;  %s304_s13 = scalar_lea.vmem %s191_s12, 256  ;;  %p309_p3 = scmp.lt.s32.totalorder %s191_s12, %s191_s12 }
  0x2a   :  { %v212_v10 = vld [vmem:[%s402_s2] ss:$0 sm:$0xff]  ;;  %p305_p2 = scmp.ne.s32.totalorder %s191_s12, %s304_s13  ;;  %p310_p4 = scmp.lt.s32.totalorder %s304_s13, %s304_s13 }
  0x2c   :  { %p311_p5 = por %p310_p4, %p309_p3 }
  0x2e   :  { %p312_p6 = pnand %p311_p5, %p305_p2 }
  0x30   :  { %225 = vmatpush3.bf16.xpose.msra.mxu0 %v252_v2 }
  0x31   :  { %226 = vmatprep.subr.bf16.mxu0 %v336_v0 }
  0x38   :  { %227 = vmatpush3.bf16.xpose.msra.mxu0 %v253_v3 }
  0x39   :  { %228 = vmatprep.subr.bf16.mxu0 %v336_v0 }
  0x40   :  { %229 = vmatpush3.bf16.xpose.msra.mxu0 %v254_v4 }
  0x41   :  { %230 = vmatprep.subr.bf16.mxu0 %v336_v0 }
  0x48   :  { %231 = vmatpush3.bf16.xpose.msra.mxu0 %v255_v5 }
  0x49   :  { %232 = vmatprep.subr.bf16.mxu0 %v336_v0 }
  0x50   :  { %233 = vmatpush3.bf16.xpose.msra.mxu0 %v256_v6 }
  0x51   :  { %234 = vmatprep.subr.bf16.mxu0 %v336_v0 }
  0x58   :  { %235 = vmatpush3.bf16.xpose.msra.mxu0 %v257_v7 }
  0x59   :  { %236 = vmatprep.subr.bf16.mxu0 %v336_v0 }
  0x60   :  { %237 = vmatpush3.bf16.xpose.msra.mxu0 %v258_v8 }
  0x67   :  { %239 = vmatmul.mubr.bf16.vlgmr.msra.gmra.mrb[0].mxu0 %v259_v9 }
 0x13a   :  { %v158_v11 = vpop.f32.mrb[0].mxu0 }
 0x13b   :  { %v181_v12 = vadd.f32 %v212_v10, %v158_v11  ;;  %v240_v13 = vpop.f32.mrb[1].mxu0 }
 0x13c   :  { %v161_v14 = vpop.f32.mrb[2].mxu0 }
 0x13d   :  { %183 = vst [vmem:[#allocation8] sm:$0xff] %v181_v12  ;;  %v182_v15 = vadd.f32 %v212_v10, %v161_v14  ;;  %v241_v16 = vpop.f32.mrb[3].mxu0 }
 0x13f   :  { %184 = vst [vmem:[#allocation8 + $0x8] sm:$0xff] %v182_v15 }
 0x140   :  { %315 = shalt.err (!%p312_p6)
}
 0x141   :  { %s316_s15 = scalar_lea.hbm %s403_s3, 256 }
 0x142   :  { %p317_p7 = scmp.ne.s32.totalorder %s403_s3, %s316_s15  ;;  %p320_p8 = scmp.lt.u32.totalorder %s316_s15, %s403_s3 }
 0x144   :  { %p322_p9 = pnand %p320_p8, %p317_p7 }
 0x146   :  { %325 = shalt.err (!%p322_p9)
}
 0x147   :  { %s339_s20 = smov 128   ;;  %s340_s21 = smov 8  }
 0x148   :  { %196 = dma.vmem_to_hbm [thread:$0]  %s191_s12, 256, %s403_s3, [#allocation5], %s339_s20, %s339_s20, %s340_s21  }
 0x149   :  { %330 = dma.done.wait [#allocation5], 256  }
 0x14a   :  { %331 = vsyncadd [#allocation5], 4294967040 }
 0x14b   :  { %200 = vsyncpa [#allocation4], 1 }
 0x14c   :  { %201 = vsyncpa [#allocation7], 1 }
 0x14d   :  { %202 = vsyncpa [#allocation5], 1 }

</bundles_post_ra>
